<compile_context>
chip_gen: v7x
topology: tpu7x:2x2x1
jax: 0.10.0
libtpu: 0.0.40
codegen_flags: <defaults>
</compile_context>

<pallas_src>
import jax
import jax.numpy as jnp
from jax.experimental import pallas as pl
from jax.experimental.pallas import tpu as pltpu

LANE = 128
SUBLANE = 8
MAX_TILE_B = 512  # ~9-10 MB resident at 512 rows -> fits v5e's 16 MiB scoped default


def _round_up(n, m):
    return ((n + m - 1) // m) * m


def mlp_kernel(x_ref, w1_ref, b1_ref, w2_ref, b2_ref, w3_ref, b3_ref, o_ref):
    # x arrives f32 straight from HBM (no separate pad/cast pass in the
    # wrapper); cast to bf16 here so the MXU gets its native input while
    # accumulation stays f32 via preferred_element_type.
    x = x_ref[...].astype(jnp.bfloat16)
    h1 = jnp.dot(x, w1_ref[...], preferred_element_type=jnp.float32) + b1_ref[...]
    h1 = jnp.maximum(h1, 0.0).astype(jnp.bfloat16)
    h2 = jnp.dot(h1, w2_ref[...], preferred_element_type=jnp.float32) + b2_ref[...]
    h2 = jnp.maximum(h2, 0.0).astype(jnp.bfloat16)
    y = jnp.dot(h2, w3_ref[...], preferred_element_type=jnp.float32) + b3_ref[...]
    o_ref[...] = y.astype(o_ref.dtype)  # bf16 store: halves output HBM traffic


def init_mlp_params(key, in_features=784, out_features=1, hidden_features=300,
                    init_mean=0.0, init_std=0.04):
    """Replicates the PyTorch init: clamped-normal weights, bias1=0.1, others 0.
    Weights stored as (in, out) = transpose of PyTorch nn.Linear's (out, in)."""
    k1, k2, k3 = jax.random.split(key, 3)
    lo, hi = init_mean - 2 * init_std, init_mean + 2 * init_std

    def clamped_normal(k, shape):
        w = init_mean + init_std * jax.random.normal(k, shape, dtype=jnp.float32)
        return jnp.clip(w, lo, hi)

    return {
        "w1": clamped_normal(k1, (in_features, hidden_features)),
        "b1": jnp.full((1, hidden_features), 0.1, dtype=jnp.float32),
        "w2": clamped_normal(k2, (hidden_features, hidden_features)),
        "b2": jnp.zeros((1, hidden_features), dtype=jnp.float32),
        "w3": clamped_normal(k3, (hidden_features, out_features)),
        "b3": jnp.zeros((1, out_features), dtype=jnp.float32),
    }


def prepare_params(params_f32):
    """One-time: zero-pad hidden/output feature dims to lane multiples and cast
    weights to bf16.  The input (K) dim of w1 is deliberately NOT padded:
    784 is a multiple of 16, so the bf16 sublane tiling is legal, and this
    removes the junk-K FLOPs and the need to pad x."""
    in_f, hid = params_f32["w1"].shape
    out_f = params_f32["w3"].shape[1]
    hid_p = _round_up(hid, LANE)
    out_p = _round_up(out_f, LANE)

    def pad(a, shape):
        return jnp.pad(a, [(0, s - d) for d, s in zip(a.shape, shape)])

    return {
        "w1": pad(params_f32["w1"], (in_f, hid_p)).astype(jnp.bfloat16),
        "b1": pad(params_f32["b1"], (1, hid_p)),                      # f32
        "w2": pad(params_f32["w2"], (hid_p, hid_p)).astype(jnp.bfloat16),
        "b2": pad(params_f32["b2"], (1, hid_p)),                      # f32
        "w3": pad(params_f32["w3"], (hid_p, out_p)).astype(jnp.bfloat16),
        "b3": pad(params_f32["b3"], (1, out_p)),                      # f32
        "dims": (in_f, hid, out_f, hid_p, out_p),
    }


def mlp_forward(x, kparams, *, tile_b=None):
    """x: (..., in_features) float32; kparams from prepare_params()."""
    in_f, hid, out_f, hid_p, out_p = kparams["dims"]
    x = x.reshape(-1, in_f)                 # emulate PyTorch x.view(-1, in_features)
    B = x.shape[0]

    # --- batch tiling ---------------------------------------------------------
    # Single fat step for B <= 512 (per-step overhead ~0.35 us dominates tiny
    # steps).  For larger B: balanced tiles capped at 512 rows and an even step
    # count so v7x's 2 TensorCores split the "parallel" axis evenly.  Tiles are
    # multiples of 16 when the grid has >1 step so the bf16 output block tiles
    # cleanly; the single-step case uses the full array as the block (exempt).
    if tile_b is None:
        b8 = _round_up(B, SUBLANE)
        if b8 <= MAX_TILE_B:
            tile_b = b8
        else:
            num = pl.cdiv(b8, MAX_TILE_B)
            if num % 2 == 1:
                num += 1
            tile_b = _round_up(pl.cdiv(b8, num), 2 * SUBLANE)
    else:
        tile_b = _round_up(tile_b, 2 * SUBLANE)
    B_pad = _round_up(B, tile_b)
    grid = (B_pad // tile_b,)
    # NOTE: only raise tile_b past ~1024 with an explicit vmem_limit_bytes
    # (v5e's scoped-VMEM default is 16 MiB).

    # batch-only padding (no dtype change, no lane padding); skipped entirely
    # when B is already a multiple of the tile.
    if B_pad != B:
        x = jnp.pad(x, ((0, B_pad - B), (0, 0)))

    # --- cost estimate (advisory) --------------------------------------------
    flops = 2 * B_pad * (in_f * hid_p + hid_p * hid_p + hid_p * out_p)
    bytes_accessed = (
        B_pad * in_f * 4
        + (kparams["w1"].size + kparams["w2"].size + kparams["w3"].size) * 2
        + (kparams["b1"].size + kparams["b2"].size + kparams["b3"].size) * 4
        + B_pad * out_p * 2
    )
    cost = pl.CostEstimate(flops=flops, transcendentals=0,
                           bytes_accessed=bytes_accessed)

    # weights / biases are small and fully resident every grid step
    def w_spec(shape):
        return pl.BlockSpec(shape, lambda i: (0, 0))

    out = pl.pallas_call(
        mlp_kernel,
        out_shape=jax.ShapeDtypeStruct((B_pad, out_p), jnp.bfloat16),
        grid_spec=pltpu.PrefetchScalarGridSpec(
            num_scalar_prefetch=0,
            grid=grid,
            in_specs=[
                pl.BlockSpec((tile_b, in_f), lambda i: (i, 0)),   # f32, K unpadded
                w_spec((in_f, hid_p)),
                w_spec((1, hid_p)),
                w_spec((hid_p, hid_p)),
                w_spec((1, hid_p)),
                w_spec((hid_p, out_p)),
                w_spec((1, out_p)),
            ],
            out_specs=pl.BlockSpec((tile_b, out_p), lambda i: (i, 0)),
        ),
        compiler_params=pltpu.CompilerParams(
            dimension_semantics=("parallel",),
        ),
        cost_estimate=cost,
    )(x, kparams["w1"], kparams["b1"], kparams["w2"], kparams["b2"],
      kparams["w3"], kparams["b3"])

    # slice away batch / lane padding and restore the module's f32 output dtype
    return (out[:B, :out_f].astype(jnp.float32),)


if __name__ == "__main__":
    key = jax.random.PRNGKey(0)
    kx, kp = jax.random.split(key)

    B, in_features, hidden, out_features = 8, 784, 300, 1
    x = jax.random.normal(kx, (B, in_features), dtype=jnp.float32)

    params = init_mlp_params(kp, in_features, out_features, hidden)
    kparams = prepare_params(params)

    (y,) = mlp_forward(x, kparams)
    y = jax.block_until_ready(y)

    # pure-JAX f32 reference (module semantics); loose tolerance due to bf16
    # weight/activation feed to the MXU and bf16 output store.
    h1 = jnp.maximum(x @ params["w1"] + params["b1"], 0.0)
    h2 = jnp.maximum(h1 @ params["w2"] + params["b2"], 0.0)
    y_ref = h2 @ params["w3"] + params["b3"]

    assert y.shape == (B, out_features), y.shape
    assert jnp.allclose(y, y_ref, atol=5e-2, rtol=5e-2), (
        float(jnp.max(jnp.abs(y - y_ref))))

    print("KERNEL_OK")
</pallas_src>

<mosaic_0001>
module attributes {stable_mosaic.version = 11 : i64} {
  func.func @mlp_kernel(%arg0: i32, %arg1: memref<8x784xf32, #tpu.memory_space<vmem>>, %arg2: memref<784x384xbf16, #tpu.memory_space<vmem>>, %arg3: memref<1x384xf32, #tpu.memory_space<vmem>>, %arg4: memref<384x384xbf16, #tpu.memory_space<vmem>>, %arg5: memref<1x384xf32, #tpu.memory_space<vmem>>, %arg6: memref<384x128xbf16, #tpu.memory_space<vmem>>, %arg7: memref<1x128xf32, #tpu.memory_space<vmem>>, %arg8: memref<8x128xbf16, #tpu.memory_space<vmem>>) attributes {dimension_semantics = [#tpu.dimension_semantics<parallel>], iteration_bounds = array<i64: 1>, scalar_prefetch = 0 : i64, scratch_operands = 0 : i64, tpu.core_type = #tpu.core_type<tc>, window_params = [{transform_indices = @transform_0, window_bounds = array<i64: 8, 784>}, {pipeline_mode = #tpu.pipeline_mode<synchronous>, transform_indices = @transform_1, window_bounds = array<i64: 784, 384>}, {pipeline_mode = #tpu.pipeline_mode<synchronous>, transform_indices = @transform_2, window_bounds = array<i64: 1, 384>}, {pipeline_mode = #tpu.pipeline_mode<synchronous>, transform_indices = @transform_3, window_bounds = array<i64: 384, 384>}, {pipeline_mode = #tpu.pipeline_mode<synchronous>, transform_indices = @transform_4, window_bounds = array<i64: 1, 384>}, {pipeline_mode = #tpu.pipeline_mode<synchronous>, transform_indices = @transform_5, window_bounds = array<i64: 384, 128>}, {pipeline_mode = #tpu.pipeline_mode<synchronous>, transform_indices = @transform_6, window_bounds = array<i64: 1, 128>}, {transform_indices = @transform_7, window_bounds = array<i64: 8, 128>}]} {
    %c0 = arith.constant 0 : index
    %c0_0 = arith.constant 0 : index
    %0 = vector.load %arg1[%c0, %c0_0] : memref<8x784xf32, #tpu.memory_space<vmem>>, vector<8x784xf32>
    %1 = arith.truncf %0 : vector<8x784xf32> to vector<8x784xbf16>
    %c0_1 = arith.constant 0 : index
    %c0_2 = arith.constant 0 : index
    %2 = vector.load %arg2[%c0_1, %c0_2] : memref<784x384xbf16, #tpu.memory_space<vmem>>, vector<784x384xbf16>
    %cst = arith.constant dense<0.000000e+00> : vector<8x384xf32>
    %3 = tpu.matmul %1, %2, %cst {dimension_numbers = #tpu.dot_dimension_numbers<[1], [0], [0], [1], [0, 0, 1, 1], [], []>} : vector<8x784xbf16>, vector<784x384xbf16>, vector<8x384xf32> -> vector<8x384xf32>
    %c0_3 = arith.constant 0 : index
    %c0_4 = arith.constant 0 : index
    %4 = vector.load %arg3[%c0_3, %c0_4] : memref<1x384xf32, #tpu.memory_space<vmem>>, vector<1x384xf32>
    %5 = vector.broadcast %4 : vector<1x384xf32> to vector<8x384xf32>
    %6 = arith.addf %3, %5 : vector<8x384xf32>
    %cst_5 = arith.constant 0.000000e+00 : f32
    %7 = vector.broadcast %cst_5 : f32 to vector<8x384xf32>
    %8 = arith.maximumf %6, %7 : vector<8x384xf32>
    %9 = arith.truncf %8 : vector<8x384xf32> to vector<8x384xbf16>
    %c0_6 = arith.constant 0 : index
    %c0_7 = arith.constant 0 : index
    %10 = vector.load %arg4[%c0_6, %c0_7] : memref<384x384xbf16, #tpu.memory_space<vmem>>, vector<384x384xbf16>
    %cst_8 = arith.constant dense<0.000000e+00> : vector<8x384xf32>
    %11 = tpu.matmul %9, %10, %cst_8 {dimension_numbers = #tpu.dot_dimension_numbers<[1], [0], [0], [1], [0, 0, 1, 1], [], []>} : vector<8x384xbf16>, vector<384x384xbf16>, vector<8x384xf32> -> vector<8x384xf32>
    %c0_9 = arith.constant 0 : index
    %c0_10 = arith.constant 0 : index
    %12 = vector.load %arg5[%c0_9, %c0_10] : memref<1x384xf32, #tpu.memory_space<vmem>>, vector<1x384xf32>
    %13 = vector.broadcast %12 : vector<1x384xf32> to vector<8x384xf32>
    %14 = arith.addf %11, %13 : vector<8x384xf32>
    %cst_11 = arith.constant 0.000000e+00 : f32
    %15 = vector.broadcast %cst_11 : f32 to vector<8x384xf32>
    %16 = arith.maximumf %14, %15 : vector<8x384xf32>
    %17 = arith.truncf %16 : vector<8x384xf32> to vector<8x384xbf16>
    %c0_12 = arith.constant 0 : index
    %c0_13 = arith.constant 0 : index
    %18 = vector.load %arg6[%c0_12, %c0_13] : memref<384x128xbf16, #tpu.memory_space<vmem>>, vector<384x128xbf16>
    %cst_14 = arith.constant dense<0.000000e+00> : vector<8x128xf32>
    %19 = tpu.matmul %17, %18, %cst_14 {dimension_numbers = #tpu.dot_dimension_numbers<[1], [0], [0], [1], [0, 0, 1, 1], [], []>} : vector<8x384xbf16>, vector<384x128xbf16>, vector<8x128xf32> -> vector<8x128xf32>
    %c0_15 = arith.constant 0 : index
    %c0_16 = arith.constant 0 : index
    %20 = vector.load %arg7[%c0_15, %c0_16] : memref<1x128xf32, #tpu.memory_space<vmem>>, vector<1x128xf32>
    %21 = vector.broadcast %20 : vector<1x128xf32> to vector<8x128xf32>
    %22 = arith.addf %19, %21 : vector<8x128xf32>
    %23 = arith.truncf %22 : vector<8x128xf32> to vector<8x128xbf16>
    %c0_17 = arith.constant 0 : index
    %c0_18 = arith.constant 0 : index
    %24 = vector.load %arg8[%c0_17, %c0_18] : memref<8x128xbf16, #tpu.memory_space<vmem>>, vector<8x128xbf16>
    tpu.vector_store %arg8[%c0_17, %c0_18], %23 {strides = array<i32>} : memref<8x128xbf16, #tpu.memory_space<vmem>>, vector<8x128xbf16>,
    return
  }
  func.func @transform_0(%arg0: i32) -> (i32, i32) {
    %c0_i32 = arith.constant 0 : i32
    %c0_i32_0 = arith.constant 0 : i32
    return %arg0, %c0_i32 : i32, i32
  }
  func.func @transform_1(%arg0: i32) -> (i32, i32) {
    %c0_i32 = arith.constant 0 : i32
    %c0_i32_0 = arith.constant 0 : i32
    %c0_i32_1 = arith.constant 0 : i32
    return %c0_i32, %c0_i32_0 : i32, i32
  }
  func.func @transform_2(%arg0: i32) -> (i32, i32) {
    %c0_i32 = arith.constant 0 : i32
    %c0_i32_0 = arith.constant 0 : i32
    %c0_i32_1 = arith.constant 0 : i32
    return %c0_i32, %c0_i32_0 : i32, i32
  }
  func.func @transform_3(%arg0: i32) -> (i32, i32) {
    %c0_i32 = arith.constant 0 : i32
    %c0_i32_0 = arith.constant 0 : i32
    %c0_i32_1 = arith.constant 0 : i32
    return %c0_i32, %c0_i32_0 : i32, i32
  }
  func.func @transform_4(%arg0: i32) -> (i32, i32) {
    %c0_i32 = arith.constant 0 : i32
    %c0_i32_0 = arith.constant 0 : i32
    %c0_i32_1 = arith.constant 0 : i32
    return %c0_i32, %c0_i32_0 : i32, i32
  }
  func.func @transform_5(%arg0: i32) -> (i32, i32) {
    %c0_i32 = arith.constant 0 : i32
    %c0_i32_0 = arith.constant 0 : i32
    %c0_i32_1 = arith.constant 0 : i32
    return %c0_i32, %c0_i32_0 : i32, i32
  }
  func.func @transform_6(%arg0: i32) -> (i32, i32) {
    %c0_i32 = arith.constant 0 : i32
    %c0_i32_0 = arith.constant 0 : i32
    %c0_i32_1 = arith.constant 0 : i32
    return %c0_i32, %c0_i32_0 : i32, i32
  }
  func.func @transform_7(%arg0: i32) -> (i32, i32) {
    %c0_i32 = arith.constant 0 : i32
    %c0_i32_0 = arith.constant 0 : i32
    return %arg0, %c0_i32 : i32, i32
  }
}

</mosaic_0001>

<bundles_post_ra>
// kernel: tpu_custom_call.1
= control target key start
LH: loop header
LB: loop body
LE: loop exit
PB: predicated region body
PF: predicated region fallthrough
CT: control target
= control target key end

     0   :  { %12 = vsyncpa [#allocation3], 0  ;;  %s3460_s0 = inlined_call_operand.hbm [shape: f32[8,784], index: 0, kind: input, shape index: {}]   ;;  %s3461_s1 = inlined_call_operand.hbm [shape: bf16[784,384], index: 1, kind: input, shape index: {}]   ;;  %s3462_s2 = inlined_call_operand.vmem [shape: f32[1,384], index: 2, kind: input, shape index: {}]   ;;  %s3463_s3 = inlined_call_operand.hbm [shape: bf16[384,384], index: 3, kind: input, shape index: {}]   ;;  %s3464_s4 = inlined_call_operand.vmem [shape: f32[1,384], index: 4, kind: input, shape index: {}]   ;;  %s3465_s5 = inlined_call_operand.hbm [shape: bf16[384,128], index: 5, kind: input, shape index: {}]   ;;  %s3466_s6 = inlined_call_operand.vmem [shape: f32[1,128], index: 6, kind: input, shape index: {}]   ;;  %s3467_s7 = inlined_call_operand.hbm [shape: bf16[8,128], index: 7, kind: output, shape index: {}]  }
   0x1   :  { %13 = vsyncpa [#allocation6], 0 }
   0x2   :  { %14 = vsyncpa [#allocation9], 0 }
   0x3   :  { %15 = vsyncpa [#allocation4], 0  ;;  %s3277_s24 = smov [#allocation5]   ;;  %s3159_s28 = scalar_lea.hbm %s3461_s1, 18816 }
   0x4   :  { %s31_s25 = sshll.u32 %s3277_s24, 4  ;;  %p3160_p0 = scmp.ne.s32.totalorder %s3461_s1, %s3159_s28  ;;  %s32_s25 = int_to_ptr.vmem [resolvable:$true] %s31_s25 }
   0x5   :  { %p3163_p1 = scmp.lt.u32.totalorder %s3159_s28, %s3461_s1 }
   0x7   :  { %p3165_p2 = pnand %p3163_p1, %p3160_p0 }
   0x9   :  { %3168 = shalt.err (!%p3165_p2)
}
   0xa   :  { %s3169_s10 = scalar_lea.vmem %s32_s25, 18816  ;;  %p3174_p4 = scmp.lt.s32.totalorder %s32_s25, %s32_s25 }
   0xb   :  { %p3170_p3 = scmp.ne.s32.totalorder %s32_s25, %s3169_s10  ;;  %p3175_p5 = scmp.lt.s32.totalorder %s3169_s10, %s3169_s10 }
   0xd   :  { %p3176_p6 = por %p3175_p5, %p3174_p4 }
   0xf   :  { %p3177_p7 = pnand %p3176_p6, %p3170_p3 }
  0x11   :  { %3180 = shalt.err (!%p3177_p7)
}
  0x12   :  { %s3278_s11 = smov 192   ;;  %s3279_s12 = smov 12  }
  0x13   :  { %37 = dma.hbm_to_vmem [thread:$0]  %s3461_s1, 18816, %s32_s25, [#allocation6], %s3278_s11, %s3278_s11, %s3279_s12  }
  0x14   :  { %s3280_s15 = smov [#allocation2]   ;;  %s3281_s17 = smov [#allocation7]  }
  0x15   :  { %s22_s16 = sshll.u32 %s3280_s15, 4  ;;  %s45_s18 = sshll.u32 %s3281_s17, 4  ;;  %s23_s16 = int_to_ptr.vmem [resolvable:$true] %s22_s16  ;;  %s46_s18 = int_to_ptr.vmem [resolvable:$true] %s45_s18 }
  0x16   :  { %s3181_s21 = scalar_lea.hbm %s3460_s0, 896 }
  0x17   :  { %p3182_p8 = scmp.ne.s32.totalorder %s3460_s0, %s3181_s21  ;;  %p3185_p9 = scmp.lt.u32.totalorder %s3181_s21, %s3460_s0 }
  0x19   :  { %p3187_p10 = pnand %p3185_p9, %p3182_p8 }
  0x1b   :  { %3190 = shalt.err (!%p3187_p10)
}
  0x1c   :  { %s3191_s1 = scalar_lea.vmem %s23_s16, 896  ;;  %p3196_p12 = scmp.lt.s32.totalorder %s23_s16, %s23_s16 }
  0x1d   :  { %p3192_p11 = scmp.ne.s32.totalorder %s23_s16, %s3191_s1  ;;  %p3197_p13 = scmp.lt.s32.totalorder %s3191_s1, %s3191_s1 }
  0x1f   :  { %p3198_p0 = por %p3197_p13, %p3196_p12 }
  0x21   :  { %p3199_p1 = pnand %p3198_p0, %p3192_p11 }
  0x23   :  { %3202 = shalt.err (!%p3199_p1)
}
  0x24   :  { %25 = dma.hbm_to_vmem [thread:$0]  %s3460_s0, 896, %s23_s16, [#allocation3]  }
  0x25   :  { %s3203_s30 = scalar_lea.hbm %s3463_s3, 9216 }
  0x26   :  { %p3204_p2 = scmp.ne.s32.totalorder %s3463_s3, %s3203_s30  ;;  %p3207_p3 = scmp.lt.u32.totalorder %s3203_s30, %s3463_s3 }
  0x28   :  { %p3209_p4 = pnand %p3207_p3, %p3204_p2 }
  0x2a   :  { %3212 = shalt.err (!%p3209_p4)
}
  0x2b   :  { %s3213_s14 = scalar_lea.vmem %s46_s18, 9216  ;;  %p3218_p6 = scmp.lt.s32.totalorder %s46_s18, %s46_s18 }
  0x2c   :  { %p3214_p5 = scmp.ne.s32.totalorder %s46_s18, %s3213_s14  ;;  %p3219_p7 = scmp.lt.s32.totalorder %s3213_s14, %s3213_s14 }
  0x2e   :  { %p3220_p8 = por %p3219_p7, %p3218_p6 }
  0x30   :  { %p3221_p9 = pnand %p3220_p8, %p3214_p5 }
  0x32   :  { %3224 = shalt.err (!%p3221_p9)
}
  0x33   :  { %51 = dma.hbm_to_vmem [thread:$0]  %s3463_s3, 9216, %s46_s18, [#allocation6], %s3278_s11, %s3278_s11, %s3279_s12  }
  0x34   :  { %s3282_s16 = smov [#allocation8]   ;;  %s3225_s21 = scalar_lea.hbm %s3465_s5, 3072 }
  0x35   :  { %s59_s17 = sshll.u32 %s3282_s16, 4  ;;  %p3226_p10 = scmp.ne.s32.totalorder %s3465_s5, %s3225_s21  ;;  %s60_s17 = int_to_ptr.vmem [resolvable:$true] %s59_s17 }
  0x36   :  { %p3229_p11 = scmp.lt.u32.totalorder %s3225_s21, %s3465_s5 }
  0x38   :  { %p3231_p12 = pnand %p3229_p11, %p3226_p10 }
  0x3a   :  { %3234 = shalt.err (!%p3231_p12)
}
  0x3b   :  { %s3235_s1 = scalar_lea.vmem %s60_s17, 3072  ;;  %p3240_p0 = scmp.lt.s32.totalorder %s60_s17, %s60_s17 }
  0x3c   :  { %p3236_p13 = scmp.ne.s32.totalorder %s60_s17, %s3235_s1  ;;  %p3241_p1 = scmp.lt.s32.totalorder %s3235_s1, %s3235_s1 }
  0x3e   :  { %p3242_p2 = por %p3241_p1, %p3240_p0 }
  0x40   :  { %p3243_p3 = pnand %p3242_p2, %p3236_p13 }
  0x42   :  { %3246 = shalt.err (!%p3243_p3)
}
  0x43   :  { %s3283_s3 = smov 64   ;;  %s3284_s11 = smov 4  }
  0x44   :  { %65 = dma.hbm_to_vmem [thread:$0]  %s3465_s5, 3072, %s60_s17, [#allocation9], %s3283_s3, %s3283_s3, %s3284_s11  }
  0x45   :  { %3269 = dma.done.wait [#allocation3], 896  }
  0x46   :  { %3270 = vsyncadd [#allocation3], 4294966400 }
  0x47   :  { %3271 = dma.done.wait [#allocation6], 28032  }
  0x48   :  { %3272 = vsyncadd [#allocation6], 4294939264 }
  0x49   :  { %3273 = dma.done.wait [#allocation9], 3072  }
  0x4a   :  { %3274 = vsyncadd [#allocation9], 4294964224  ;;  %v2843_v0 = vld [vmem:[#allocation5 + $0x4] ss:$12 sps:$4 sm:$0xff]   ;;  %v2845_v1 = vld [vmem:[#allocation5] ss:$12 sps:$4 sm:$0xff]  }
  0x4b   :  { %1096 = vmatprep.subr.bf16.mxu0 %v2843_v0  ;;  %v2846_v2 = vld [vmem:[#allocation5 + $0x1c] ss:$12 sps:$4 sm:$0xff]   ;;  %v2848_v3 = vld [vmem:[#allocation5 + $0x18] ss:$12 sps:$4 sm:$0xff]   ;;  %v2849_v4 = vld [vmem:[#allocation5 + $0x34] ss:$12 sps:$4 sm:$0xff]  }
  0x4c   :  { %1097 = vmatpush1.bf16.msra.mxu0 %v2845_v1  ;;  %v2851_v5 = vld [vmem:[#allocation5 + $0x30] ss:$12 sps:$4 sm:$0xff]   ;;  %v2852_v6 = vld [vmem:[#allocation5 + $0x4c] ss:$12 sps:$4 sm:$0xff]   ;;  %v2854_v7 = vld [vmem:[#allocation5 + $0x48] ss:$12 sps:$4 sm:$0xff]  }
  0x4d   :  { %1098 = vmatprep.subr.bf16.mxu0 %v2846_v2  ;;  %v2855_v8 = vld [vmem:[#allocation5 + $0x64] ss:$12 sps:$4 sm:$0xff]   ;;  %v2857_v9 = vld [vmem:[#allocation5 + $0x60] ss:$12 sps:$4 sm:$0xff]   ;;  %v2858_v10 = vld [vmem:[#allocation5 + $0x7c] ss:$12 sps:$4 sm:$0xff]  }
  0x4e   :  { %v2860_v11 = vld [vmem:[#allocation5 + $0x78] ss:$12 sps:$4 sm:$0xff]   ;;  %v2861_v12 = vld [vmem:[#allocation5 + $0x94] ss:$12 sps:$4 sm:$0xff]   ;;  %v2863_v15 = vld [vmem:[#allocation5 + $0x90] ss:$12 sps:$4 sm:$0xff]  }
  0x4f   :  { %v82_v13 = vld [vmem:[#allocation2 + $0x8] sm:$0xff]  ;;  %v2864_v16 = vld [vmem:[#allocation5 + $0xac] ss:$12 sps:$4 sm:$0xff]   ;;  %v2870_v23 = vld [vmem:[#allocation5 + $0xdc] ss:$12 sps:$4 sm:$0xff]   ;;  %vm3286_vm0 = vmmov 0  }
  0x50   :  { %1099 = vmatpush1.bf16.msra.mxu0 %v2848_v3  ;;  %v89_v14 = vpack.c.bf16 %v82_v13, %v82_v13  ;;  %v2897_v17 = vld [vmem:[#allocation5 + $0xc8] ss:$12 sps:$4 sm:$0xff]   ;;  %v2867_v19 = vld [vmem:[#allocation5 + $0xc4] ss:$12 sps:$4 sm:$0xff]   ;;  %v2902_v21 = vld [vmem:[#allocation5 + $0xe0] ss:$12 sps:$4 sm:$0xff]  }
  0x51   :  { %1100 = vmatprep.subr.bf16.mxu0 %v2849_v4  ;;  %v2866_v18 = vld [vmem:[#allocation5 + $0xa8] ss:$12 sps:$4 sm:$0xff]   ;;  %2635 = vmatprep.subr.bf16.mxu1 %v2897_v17  ;;  %v2869_v22 = vld [vmem:[#allocation5 + $0xc0] ss:$12 sps:$4 sm:$0xff]   ;;  %v2907_v25 = vld [vmem:[#allocation5 + $0xf8] ss:$12 sps:$4 sm:$0xff]  }
  0x52   :  { %1128 = vmatprep.mubr.bf16.mxu0 %v89_v14  ;;  %1292 = vmatprep.mubr.bf16.mxu1 %v89_v14  ;;  %v2901_v20 = vld [vmem:[#allocation5 + $0x8] ss:$12 sps:$4 sm:$0xff]   ;;  %v2906_v24 = vld [vmem:[#allocation5 + $0x20] ss:$12 sps:$4 sm:$0xff]   ;;  %v2872_v26 = vld [vmem:[#allocation5 + $0xd8] ss:$12 sps:$4 sm:$0xff]  }
  0x53   :  { %2636 = vmatpush3.bf16.msra.mxu1 %v2901_v20  ;;  %v2911_v27 = vld [vmem:[#allocation5 + $0x38] ss:$12 sps:$4 sm:$0xff]   ;;  %v2912_v28 = vld [vmem:[#allocation5 + $0x110] ss:$12 sps:$4 sm:$0xff]   ;;  %v2873_v29 = vld [vmem:[#allocation5 + $0xf4] ss:$12 sps:$4 sm:$0xff]  }
  0x54   :  { %1101 = vmatpush1.bf16.msra.mxu0 %v2851_v5  ;;  %2637 = vmatprep.subr.bf16.mxu1 %v2902_v21  ;;  %v2916_v30 = vld [vmem:[#allocation5 + $0x50] ss:$12 sps:$4 sm:$0xff]   ;;  %v2917_v31 = vld [vmem:[#allocation5 + $0x128] ss:$12 sps:$4 sm:$0xff]   ;;  %v2876_v33 = vld [vmem:[#allocation5 + $0x10c] ss:$12 sps:$4 sm:$0xff]  }
  0x55   :  { %1102 = vmatprep.subr.bf16.mxu0 %v2852_v6  ;;  %v2875_v32 = vld [vmem:[#allocation5 + $0xf0] ss:$12 sps:$4 sm:$0xff]   ;;  %v2921_v34 = vld [vmem:[#allocation5 + $0x68] ss:$12 sps:$4 sm:$0xff]   ;;  %v2922_v35 = vld [vmem:[#allocation5 + $0x140] ss:$12 sps:$4 sm:$0xff]  }
  0x56   :  { %v2878_v36 = vld [vmem:[#allocation5 + $0x108] ss:$12 sps:$4 sm:$0xff]   ;;  %v2879_v37 = vld [vmem:[#allocation5 + $0x124] ss:$12 sps:$4 sm:$0xff]   ;;  %v2926_v38 = vld [vmem:[#allocation5 + $0x80] ss:$12 sps:$4 sm:$0xff]  }
  0x57   :  { %2638 = vmatpush3.bf16.msra.mxu1 %v2906_v24  ;;  %v2927_v39 = vld [vmem:[#allocation5 + $0x158] ss:$12 sps:$4 sm:$0xff]   ;;  %v2881_v40 = vld [vmem:[#allocation5 + $0x120] ss:$12 sps:$4 sm:$0xff]   ;;  %v2882_v41 = vld [vmem:[#allocation5 + $0x13c] ss:$12 sps:$4 sm:$0xff]  }
  0x58   :  { %1103 = vmatpush1.bf16.msra.mxu0 %v2854_v7  ;;  %2639 = vmatprep.subr.bf16.mxu1 %v2907_v25  ;;  %v2931_v42 = vld [vmem:[#allocation5 + $0x98] ss:$12 sps:$4 sm:$0xff]   ;;  %v2932_v43 = vld [vmem:[#allocation5 + $0x170] ss:$12 sps:$4 sm:$0xff]   ;;  %v2885_v45 = vld [vmem:[#allocation5 + $0x154] ss:$12 sps:$4 sm:$0xff]  }
  0x59   :  { %1104 = vmatprep.subr.bf16.mxu0 %v2855_v8  ;;  %v2884_v44 = vld [vmem:[#allocation5 + $0x138] ss:$12 sps:$4 sm:$0xff]   ;;  %v2887_v46 = vld [vmem:[#allocation5 + $0x150] ss:$12 sps:$4 sm:$0xff]   ;;  %v2937_v48 = vld [vmem:[#allocation5 + $0x248] ss:$12 sps:$4 sm:$0xff]  }
  0x5a   :  { %v2936_v47 = vld [vmem:[#allocation5 + $0xb0] ss:$12 sps:$4 sm:$0xff]   ;;  %v81_v49 = vld [vmem:[#allocation2] sm:$0xff]  ;;  %v2947_v57 = vld [vmem:[#allocation5 + $0x278] ss:$12 sps:$4 sm:$0xff]   ;;  %vm1092_vm1 = vcmask 130048  }
  0x5b   :  { %2640 = vmatpush3.bf16.msra.mxu1 %v2911_v27  ;;  %v2888_v50 = vld [vmem:[#allocation5 + $0x16c] ss:$12 sps:$4 sm:$0xff]   ;;  %v2941_v51 = vld [vmem:[#allocation5 + $0x188] ss:$12 sps:$4 sm:$0xff]   ;;  %v88_v52 = vpack.c.bf16 %v81_v49, %v81_v49  ;;  %v2893_v55 = vld [vmem:[#allocation5 + $0x184] ss:$12 sps:$4 sm:$0xff]  }
  0x5c   :  { %1105 = vmatpush1.bf16.msra.mxu0 %v2857_v9  ;;  %2641 = vmatprep.subr.bf16.mxu1 %v2912_v28  ;;  %v2942_v53 = vld [vmem:[#allocation5 + $0x260] ss:$12 sps:$4 sm:$0xff]   ;;  %v2890_v54 = vld [vmem:[#allocation5 + $0x168] ss:$12 sps:$4 sm:$0xff]   ;;  %v2951_v60 = vld [vmem:[#allocation5 + $0x1b8] ss:$12 sps:$4 sm:$0xff]  }
  0x5d   :  { %1106 = vmatprep.subr.bf16.mxu0 %v2858_v10  ;;  %v2946_v56 = vld [vmem:[#allocation5 + $0x1a0] ss:$12 sps:$4 sm:$0xff]   ;;  %v2896_v59 = vld [vmem:[#allocation5 + $0x19c] ss:$12 sps:$4 sm:$0xff]   ;;  %v2894_v62 = vld [vmem:[#allocation5 + $0x198] ss:$12 sps:$4 sm:$0xff]  }
  0x5e   :  { %v2891_v58 = vld [vmem:[#allocation5 + $0x180] ss:$12 sps:$4 sm:$0xff]   ;;  %v2952_v61 = vld [vmem:[#allocation5 + $0x290] ss:$12 sps:$4 sm:$0xff]   ;;  %v2957_v1 = vld [vmem:[#allocation5 + $0x2a8] ss:$12 sps:$4 sm:$0xff]  }
  0x5f   :  { %2642 = vmatpush3.bf16.msra.mxu1 %v2916_v30  ;;  %v2900_v63 = vld [vmem:[#allocation5 + $0x1b4] ss:$12 sps:$4 sm:$0xff]   ;;  %v2956_v0 = vld [vmem:[#allocation5 + $0x1d0] ss:$12 sps:$4 sm:$0xff]   ;;  %v2905_v3 = vld [vmem:[#allocation5 + $0x1cc] ss:$12 sps:$4 sm:$0xff]  }
  0x60   :  { %1107 = vmatpush1.bf16.msra.mxu0 %v2860_v11  ;;  %2643 = vmatprep.subr.bf16.mxu1 %v2917_v31  ;;  %v2898_v2 = vld [vmem:[#allocation5 + $0x1b0] ss:$12 sps:$4 sm:$0xff]   ;;  %v84_v4 = vld [vmem:[#allocation2 + $0x18] sm:$0xff]  ;;  %v2961_v5 = vld [vmem:[#allocation5 + $0x1e8] ss:$12 sps:$4 sm:$0xff]   ;;  %s3288_s29 = smov [#allocation10]  }
  0x61   :  { %1108 = vmatprep.subr.bf16.mxu0 %v2861_v12  ;;  %v91_v6 = vpack.c.bf16 %v84_v4, %v84_v4  ;;  %v2962_v7 = vld [vmem:[#allocation5 + $0x2c0] ss:$12 sps:$4 sm:$0xff]   ;;  %v2903_v8 = vld [vmem:[#allocation5 + $0x1c8] ss:$12 sps:$4 sm:$0xff]   ;;  %v2910_v9 = vld [vmem:[#allocation5 + $0x1e4] ss:$12 sps:$4 sm:$0xff]  }
  0x62   :  { %v2966_v10 = vld [vmem:[#allocation5 + $0x200] ss:$12 sps:$4 sm:$0xff]   ;;  %v2967_v11 = vld [vmem:[#allocation5 + $0x2d8] ss:$12 sps:$4 sm:$0xff]   ;;  %v2915_v13 = vld [vmem:[#allocation5 + $0x1fc] ss:$12 sps:$4 sm:$0xff]  }
  0x63   :  { %2644 = vmatpush3.bf16.msra.mxu1 %v2921_v34  ;;  %v2908_v12 = vld [vmem:[#allocation5 + $0x1e0] ss:$12 sps:$4 sm:$0xff]   ;;  %v2971_v14 = vld [vmem:[#allocation5 + $0x218] ss:$12 sps:$4 sm:$0xff]   ;;  %v2918_v20 = vld [vmem:[#allocation5 + $0x210] ss:$12 sps:$4 sm:$0xff]  }
  0x64   :  { %1109 = vmatpush1.bf16.msra.mxu0 %v2863_v15  ;;  %2645 = vmatprep.subr.bf16.mxu1 %v2922_v35  ;;  %v2972_v15 = vld [vmem:[#allocation5 + $0x2f0] ss:$12 sps:$4 sm:$0xff]   ;;  %v2920_v17 = vld [vmem:[#allocation5 + $0x214] ss:$12 sps:$4 sm:$0xff]   ;;  %v2933_v34 = vld [vmem:[#allocation5 + $0x258] ss:$12 sps:$4 sm:$0xff]  }
  0x65   :  { %1110 = vmatprep.subr.bf16.mxu0 %v2864_v16  ;;  %v2913_v16 = vld [vmem:[#allocation5 + $0x1f8] ss:$12 sps:$4 sm:$0xff]   ;;  %v2982_v25 = vld [vmem:[#allocation5 + $0x3e0] ss:$12 sps:$4 sm:$0xff]   ;;  %v2935_v31 = vld [vmem:[#allocation5 + $0x25c] ss:$12 sps:$4 sm:$0xff]  }
  0x66   :  { %v83_v21 = vld [vmem:[#allocation2 + $0x10] sm:$0xff]  ;;  %v2930_v27 = vld [vmem:[#allocation5 + $0x244] ss:$12 sps:$4 sm:$0xff]   ;;  %v2986_v28 = vld [vmem:[#allocation5 + $0x320] ss:$12 sps:$4 sm:$0xff]   ;;  %s2378_s30 = sshll.u32 %s3288_s29, 4  ;;  %s2379_s30 = int_to_ptr.vmem [resolvable:$true] %s2378_s30 }
  0x67   :  { %2646 = vmatpush3.bf16.msra.mxu1 %v2926_v38  ;;  %v3383_v24 = vpack.c.bf16 %v83_v21, %v83_v21  ;;  %v2928_v30 = vld [vmem:[#allocation5 + $0x240] ss:$12 sps:$4 sm:$0xff]   ;;  %v2938_v38 = vld [vmem:[#allocation5 + $0x270] ss:$12 sps:$4 sm:$0xff]   ;;  %v3051_v21 = vld [vmem:[#allocation7 + $0x60] ss:$12 sps:$4 sm:$0xff]   ;;  %p3252_p5 = scmp.lt.s32.totalorder %s2379_s30, %s2379_s30 }
  0x68   :  { %1111 = vmatpush1.bf16.msra.mxu0 %v2866_v18  ;;  %2647 = vmatprep.subr.bf16.mxu1 %v2927_v39  ;;  %v2976_v18 = vld [vmem:[#allocation5 + $0x230] ss:$12 sps:$4 sm:$0xff]   ;;  %v2940_v35 = vld [vmem:[#allocation5 + $0x274] ss:$12 sps:$4 sm:$0xff]   ;;  %v2945_v39 = vld [vmem:[#allocation5 + $0x28c] ss:$12 sps:$4 sm:$0xff]  }
  0x69   :  { %1112 = vmatprep.subr.bf16.mxu0 %v2867_v19  ;;  %v2977_v19 = vld [vmem:[#allocation5 + $0x3c8] ss:$12 sps:$4 sm:$0xff]   ;;  %s3247_s8 = scalar_lea.vmem %s2379_s30, 64 }
  0x6a   :  { %v2955_v49 = vld [vmem:[#allocation5 + $0x2bc] ss:$12 sps:$4 sm:$0xff]   ;;  %p3248_p4 = scmp.ne.s32.totalorder %s2379_s30, %s3247_s8  ;;  %p3253_p6 = scmp.lt.s32.totalorder %s3247_s8, %s3247_s8 }
  0x6b   :  { %2648 = vmatpush3.bf16.msra.mxu1 %v2931_v42  ;;  %v3002_v42 = vld [vmem:[#allocation5 + $0x440] ss:$12 sps:$4 sm:$0xff]  }
  0x6c   :  { %1113 = vmatpush1.bf16.msra.mxu0 %v2869_v22  ;;  %2649 = vmatprep.subr.bf16.mxu1 %v2932_v43  ;;  %v2925_v22 = vld [vmem:[#allocation5 + $0x22c] ss:$12 sps:$4 sm:$0xff]   ;;  %p3254_p7 = por %p3253_p6, %p3252_p5 }
  0x6d   :  { %1114 = vmatprep.subr.bf16.mxu0 %v2870_v23  ;;  %v2981_v23 = vld [vmem:[#allocation5 + $0x308] ss:$12 sps:$4 sm:$0xff]  }
  0x6e   :  { %p3255_p8 = pnand %p3254_p7, %p3248_p4 }
  0x6f   :  { %2650 = vmatpush3.bf16.msra.mxu1 %v2936_v47  ;;  %v3007_v47 = vld [vmem:[#allocation5 + $0x458] ss:$12 sps:$4 sm:$0xff]  }
  0x70   :  { %1115 = vmatpush1.bf16.msra.mxu0 %v2872_v26  ;;  %2657 = vmatprep.subr.bf16.mxu1 %v2937_v48  ;;  %v2923_v26 = vld [vmem:[#allocation5 + $0x228] ss:$12 sps:$4 sm:$0xff]   ;;  %v2948_v48 = vld [vmem:[#allocation5 + $0x2a0] ss:$12 sps:$4 sm:$0xff]  }
  0x71   :  { %1116 = vmatprep.subr.bf16.mxu0 %v2873_v29  ;;  %v2987_v29 = vld [vmem:[#allocation5 + $0x3f8] ss:$12 sps:$4 sm:$0xff]  }
  0x72   :  { %1293 = vmatmul.mubr.bf16.vlgmr.msra.gmra.mrb[0].mxu1 %v88_v52 }
  0x73   :  { %2658 = vmatpush3.bf16.msra.mxu1 %v2941_v51  ;;  %1332 = vmatprep.mubr.bf16.mxu1 %v91_v6  ;;  %v3012_v51 = vld [vmem:[#allocation5 + $0x470] ss:$12 sps:$4 sm:$0xff]  }
  0x74   :  { %1117 = vmatpush1.bf16.msra.mxu0 %v2875_v32  ;;  %2659 = vmatprep.subr.bf16.mxu1 %v2942_v53  ;;  %v2991_v32 = vld [vmem:[#allocation5 + $0x338] ss:$12 sps:$4 sm:$0xff]   ;;  %v2960_v53 = vld [vmem:[#allocation5 + $0x2d4] ss:$12 sps:$4 sm:$0xff]  }
  0x75   :  { %1118 = vmatprep.subr.bf16.mxu0 %v2876_v33  ;;  %v2992_v33 = vld [vmem:[#allocation5 + $0x410] ss:$12 sps:$4 sm:$0xff]  }
  0x77   :  { %2660 = vmatpush3.bf16.msra.mxu1 %v2946_v56  ;;  %v2958_v56 = vld [vmem:[#allocation5 + $0x2d0] ss:$12 sps:$4 sm:$0xff]  }
  0x78   :  { %1119 = vmatpush1.bf16.msra.mxu0 %v2878_v36  ;;  %2661 = vmatprep.subr.bf16.mxu1 %v2947_v57  ;;  %v2996_v36 = vld [vmem:[#allocation5 + $0x350] ss:$12 sps:$4 sm:$0xff]   ;;  %v2965_v57 = vld [vmem:[#allocation5 + $0x2ec] ss:$12 sps:$4 sm:$0xff]  }
  0x79   :  { %1120 = vmatprep.subr.bf16.mxu0 %v2879_v37  ;;  %v2997_v37 = vld [vmem:[#allocation5 + $0x428] ss:$12 sps:$4 sm:$0xff]  }
  0x7b   :  { %2662 = vmatpush3.bf16.msra.mxu1 %v2951_v60  ;;  %v3023_v60 = vld [vmem:[#allocation5 + $0x488] ss:$12 sps:$4 sm:$0xff]  }
  0x7c   :  { %1121 = vmatpush1.bf16.msra.mxu0 %v2881_v40  ;;  %2663 = vmatprep.subr.bf16.mxu1 %v2952_v61  ;;  %v3001_v40 = vld [vmem:[#allocation5 + $0x368] ss:$12 sps:$4 sm:$0xff]  }
  0x7d   :  { %1122 = vmatprep.subr.bf16.mxu0 %v2882_v41  ;;  %v86_v41 = vld [vmem:[#allocation2 + $0x28] sm:$0xff]  ;;  %v3041_v61 = vld [vmem:[#allocation7 + $0x4] ss:$12 sps:$4 sm:$0xff]  }
  0x7e   :  { %v93_v43 = vpack.c.bf16 %v86_v41, %v86_v41  ;;  %v3030_v41 = vld [vmem:[#allocation5 + $0x450] ss:$12 sps:$4 sm:$0xff]  }
  0x7f   :  { %2664 = vmatpush3.bf16.msra.mxu1 %v2956_v0  ;;  %v87_v0 = vld [vmem:[#allocation2 + $0x30] sm:$0xff] }
  0x80   :  { %1123 = vmatpush1.bf16.msra.mxu0 %v2884_v44  ;;  %2665 = vmatprep.subr.bf16.mxu1 %v2957_v1  ;;  %v2943_v44 = vld [vmem:[#allocation5 + $0x288] ss:$12 sps:$4 sm:$0xff]   ;;  %v2968_v1 = vld [vmem:[#allocation5 + $0x300] ss:$12 sps:$4 sm:$0xff]   ;;  %v3392_v4 = vpack.c.bf16 %v87_v0, %v87_v0 }
  0x81   :  { %1124 = vmatprep.subr.bf16.mxu0 %v2885_v45  ;;  %v2950_v45 = vld [vmem:[#allocation5 + $0x2a4] ss:$12 sps:$4 sm:$0xff]   ;;  %v3073_v0 = vld [vmem:[#allocation7 + $0xf0] ss:$12 sps:$4 sm:$0xff]  }
  0x83   :  { %2666 = vmatpush3.bf16.msra.mxu1 %v2961_v5  ;;  %v3044_v5 = vld [vmem:[#allocation7 + $0x1c] ss:$12 sps:$4 sm:$0xff]  }
  0x84   :  { %1125 = vmatpush1.bf16.msra.mxu0 %v2887_v46  ;;  %2667 = vmatprep.subr.bf16.mxu1 %v2962_v7  ;;  %v3006_v46 = vld [vmem:[#allocation5 + $0x380] ss:$12 sps:$4 sm:$0xff]  }
  0x85   :  { %1126 = vmatprep.subr.bf16.mxu0 %v2888_v50  ;;  %v3011_v50 = vld [vmem:[#allocation5 + $0x398] ss:$12 sps:$4 sm:$0xff]   ;;  %v2980_v7 = vld [vmem:[#allocation5 + $0x334] ss:$12 sps:$4 sm:$0xff]  }
  0x87   :  { %2668 = vmatpush3.bf16.msra.mxu1 %v2966_v10  ;;  %v2978_v10 = vld [vmem:[#allocation5 + $0x330] ss:$12 sps:$4 sm:$0xff]  }
  0x88   :  { %1127 = vmatpush1.bf16.msra.mxu0 %v2890_v54  ;;  %2669 = vmatprep.subr.bf16.mxu1 %v2967_v11  ;;  %v3016_v54 = vld [vmem:[#allocation5 + $0x3b0] ss:$12 sps:$4 sm:$0xff]   ;;  %v2985_v11 = vld [vmem:[#allocation5 + $0x34c] ss:$12 sps:$4 sm:$0xff]  }
  0x89   :  { %1137 = vmatprep.subr.bf16.mxu0 %v2893_v55  ;;  %v85_v55 = vld [vmem:[#allocation2 + $0x20] sm:$0xff] }
  0x8b   :  { %1129 = vmatmul.mubr.bf16.vlgmr.msra.gmra.mrb[0].mxu0 %v88_v52  ;;  %2670 = vmatpush3.bf16.msra.mxu1 %v2971_v14  ;;  %v2953_v52 = vld [vmem:[#allocation5 + $0x2b8] ss:$12 sps:$4 sm:$0xff]   ;;  %v2983_v14 = vld [vmem:[#allocation5 + $0x348] ss:$12 sps:$4 sm:$0xff]  }
  0x8c   :  { %1138 = vmatpush1.bf16.msra.mxu0 %v2891_v58  ;;  %1169 = vmatprep.mubr.bf16.mxu0 %v91_v6  ;;  %v3386_v58 = vpack.c.bf16 %v85_v55, %v85_v55  ;;  %v2973_v6 = vld [vmem:[#allocation5 + $0x318] ss:$12 sps:$4 sm:$0xff]  }
  0x8d   :  { %1139 = vmatprep.subr.bf16.mxu0 %v2896_v59  ;;  %2671 = vmatprep.subr.bf16.mxu1 %v2972_v15  ;;  %v2963_v59 = vld [vmem:[#allocation5 + $0x2e8] ss:$12 sps:$4 sm:$0xff]   ;;  %v2990_v15 = vld [vmem:[#allocation5 + $0x364] ss:$12 sps:$4 sm:$0xff]  }
  0x8e   :  { %v3063_v55 = vld [vmem:[#allocation7 + $0xc0] ss:$12 sps:$4 sm:$0xff]  }
  0x8f   :  { %2672 = vmatpush3.bf16.msra.mxu1 %v2976_v18  ;;  %v2995_v18 = vld [vmem:[#allocation5 + $0x37c] ss:$12 sps:$4 sm:$0xff]  }
  0x90   :  { %1140 = vmatpush1.bf16.msra.mxu0 %v2894_v62  ;;  %2679 = vmatprep.subr.bf16.mxu1 %v2977_v19  ;;  %v2970_v62 = vld [vmem:[#allocation5 + $0x304] ss:$12 sps:$4 sm:$0xff]  }
  0x91   :  { %1141 = vmatprep.subr.bf16.mxu0 %v2900_v63  ;;  %v3285_v63 = vmov 0.0   ;;  %v2993_v19 = vld [vmem:[#allocation5 + $0x378] ss:$12 sps:$4 sm:$0xff]  }
  0x92   :  { %1333 = vmatmul.mubr.bf16.vlgmr.msra.gmra.mrb[4].mxu1 %v3383_v24 }
  0x93   :  { %2680 = vmatpush3.bf16.msra.mxu1 %v2981_v23  ;;  %1372 = vmatprep.mubr.bf16.mxu1 %v93_v43  ;;  %v2998_v23 = vld [vmem:[#allocation5 + $0x390] ss:$12 sps:$4 sm:$0xff]  }
  0x94   :  { %1142 = vmatpush1.bf16.msra.mxu0 %v2898_v2  ;;  %2681 = vmatprep.subr.bf16.mxu1 %v2982_v25  ;;  %v2975_v2 = vld [vmem:[#allocation5 + $0x31c] ss:$12 sps:$4 sm:$0xff]  }
  0x95   :  { %1143 = vmatprep.subr.bf16.mxu0 %v2905_v3  ;;  %v3039_v3 = vld [vmem:[#allocation7] ss:$12 sps:$4 sm:$0xff]   ;;  %v3003_v25 = vld [vmem:[#allocation5 + $0x3a8] ss:$12 sps:$4 sm:$0xff]  }
  0x97   :  { %2682 = vmatpush3.bf16.msra.mxu1 %v2986_v28  ;;  %v3015_v28 = vld [vmem:[#allocation5 + $0x3dc] ss:$12 sps:$4 sm:$0xff]  }
  0x98   :  { %1144 = vmatpush1.bf16.msra.mxu0 %v2903_v8  ;;  %2683 = vmatprep.subr.bf16.mxu1 %v2987_v29  ;;  %v3042_v8 = vld [vmem:[#allocation7 + $0x18] ss:$12 sps:$4 sm:$0xff]   ;;  %v3013_v29 = vld [vmem:[#allocation5 + $0x3d8] ss:$12 sps:$4 sm:$0xff]  }
  0x99   :  { %1145 = vmatprep.subr.bf16.mxu0 %v2910_v9  ;;  %v3047_v9 = vld [vmem:[#allocation7 + $0x34] ss:$12 sps:$4 sm:$0xff]  }
  0x9b   :  { %2684 = vmatpush3.bf16.msra.mxu1 %v2991_v32  ;;  %v3022_v32 = vld [vmem:[#allocation5 + $0x40c] ss:$12 sps:$4 sm:$0xff]  }
  0x9c   :  { %1146 = vmatpush1.bf16.msra.mxu0 %v2908_v12  ;;  %2685 = vmatprep.subr.bf16.mxu1 %v2992_v33  ;;  %v3045_v12 = vld [vmem:[#allocation7 + $0x30] ss:$12 sps:$4 sm:$0xff]  }
  0x9d   :  { %1147 = vmatprep.subr.bf16.mxu0 %v2915_v13  ;;  %v3050_v13 = vld [vmem:[#allocation7 + $0x4c] ss:$12 sps:$4 sm:$0xff]   ;;  %v3020_v33 = vld [vmem:[#allocation5 + $0x408] ss:$12 sps:$4 sm:$0xff]  }
  0x9f   :  { %2686 = vmatpush3.bf16.msra.mxu1 %v2996_v36  ;;  %v3029_v36 = vld [vmem:[#allocation5 + $0x43c] ss:$12 sps:$4 sm:$0xff]  }
  0xa0   :  { %1148 = vmatpush1.bf16.msra.mxu0 %v2913_v16  ;;  %2687 = vmatprep.subr.bf16.mxu1 %v2997_v37  ;;  %v3048_v16 = vld [vmem:[#allocation7 + $0x48] ss:$12 sps:$4 sm:$0xff]   ;;  %v3027_v37 = vld [vmem:[#allocation5 + $0x438] ss:$12 sps:$4 sm:$0xff]  }
  0xa1   :  { %1149 = vmatprep.subr.bf16.mxu0 %v2920_v17  ;;  %v2988_v17 = vld [vmem:[#allocation5 + $0x360] ss:$12 sps:$4 sm:$0xff]  }
  0xa3   :  { %2688 = vmatpush3.bf16.msra.mxu1 %v3001_v40  ;;  %v3032_v40 = vld [vmem:[#allocation5 + $0x454] ss:$12 sps:$4 sm:$0xff]  }
  0xa4   :  { %1150 = vmatpush1.bf16.msra.mxu0 %v2918_v20  ;;  %2689 = vmatprep.subr.bf16.mxu1 %v3002_v42  ;;  %v3000_v20 = vld [vmem:[#allocation5 + $0x394] ss:$12 sps:$4 sm:$0xff]   ;;  %v3035_v42 = vld [vmem:[#allocation5 + $0x46c] ss:$12 sps:$4 sm:$0xff]  }
  0xa5   :  { %1151 = vmatprep.subr.bf16.mxu0 %v2925_v22  ;;  %v3053_v22 = vld [vmem:[#allocation7 + $0x64] ss:$12 sps:$4 sm:$0xff]  }
  0xa7   :  { %2690 = vmatpush3.bf16.msra.mxu1 %v3006_v46  ;;  %v3287_v46 = vmov 0  }
  0xa8   :  { %1152 = vmatpush1.bf16.msra.mxu0 %v2923_v26  ;;  %2691 = vmatprep.subr.bf16.mxu1 %v3007_v47  ;;  %v3010_v26 = vld [vmem:[#allocation5 + $0x3c4] ss:$12 sps:$4 sm:$0xff]   ;;  %v3057_v47 = vld [vmem:[#allocation7 + $0x90] ss:$12 sps:$4 sm:$0xff]  }
  0xa9   :  { %1153 = vmatprep.subr.bf16.mxu0 %v2930_v27  ;;  %v3008_v27 = vld [vmem:[#allocation5 + $0x3c0] ss:$12 sps:$4 sm:$0xff]  }
  0xab   :  { %2692 = vmatpush3.bf16.msra.mxu1 %v3011_v50  ;;  %v3062_v50 = vld [vmem:[#allocation7 + $0xac] ss:$12 sps:$4 sm:$0xff]  }
  0xac   :  { %1154 = vmatpush1.bf16.msra.mxu0 %v2928_v30  ;;  %2693 = vmatprep.subr.bf16.mxu1 %v3012_v51  ;;  %v3019_v30 = vld [vmem:[#allocation5 + $0x3f4] ss:$12 sps:$4 sm:$0xff]   ;;  %v3065_v51 = vld [vmem:[#allocation7 + $0xc4] ss:$12 sps:$4 sm:$0xff]  }
  0xad   :  { %1155 = vmatprep.subr.bf16.mxu0 %v2935_v31  ;;  %v3017_v31 = vld [vmem:[#allocation5 + $0x3f0] ss:$12 sps:$4 sm:$0xff]  }
  0xaf   :  { %2694 = vmatpush3.bf16.msra.mxu1 %v3016_v54  ;;  %v3071_v54 = vld [vmem:[#allocation7 + $0xe0] ss:$12 sps:$4 sm:$0xff]  }
  0xb0   :  { %1156 = vmatpush1.bf16.msra.mxu0 %v2933_v34  ;;  %2765 = vmatprep.subr.bf16.mxu1 %v3285_v63  ;;  %v3026_v34 = vld [vmem:[#allocation5 + $0x424] ss:$12 sps:$4 sm:$0xff]  }
  0xb1   :  { %1157 = vmatprep.subr.bf16.mxu0 %v2940_v35  ;;  %v3024_v35 = vld [vmem:[#allocation5 + $0x420] ss:$12 sps:$4 sm:$0xff]  }
  0xb2   :  { %1373 = vmatmul.mubr.bf16.vlgmr.msra.gmra.mrb[8].mxu1 %v3386_v58 }
  0xb3   :  { %2766 = vmatpush3.bf16.msra.mxu1 %v3023_v60  ;;  %2767 = vmatprep.mubr.msk.bf16.mxu1 %vm3286_vm0, %v3285_v63  ;;  %v3075_v60 = vld [vmem:[#allocation7 + $0xf4] ss:$12 sps:$4 sm:$0xff]  }
  0xb4   :  { %1158 = vmatpush1.bf16.msra.mxu0 %v2938_v38  ;;  %1923 = vmatprep.subr.bf16.mxu1 %v3041_v61  ;;  %v3054_v38 = vld [vmem:[#allocation7 + $0x78] ss:$12 sps:$4 sm:$0xff]  }
  0xb5   :  { %1159 = vmatprep.subr.bf16.mxu0 %v2945_v39  ;;  %v3056_v39 = vld [vmem:[#allocation7 + $0x7c] ss:$12 sps:$4 sm:$0xff]   ;;  %v3077_v61 = vld [vmem:[#allocation7 + $0x38] ss:$12 sps:$4 sm:$0xff]  }
  0xb8   :  { %1160 = vmatpush1.bf16.msra.mxu0 %v2943_v44  ;;  %v3038_v44 = vld [vmem:[#allocation5 + $0x484] ss:$12 sps:$4 sm:$0xff]  }
  0xb9   :  { %1161 = vmatprep.subr.bf16.mxu0 %v2950_v45  ;;  %v3036_v45 = vld [vmem:[#allocation5 + $0x480] ss:$12 sps:$4 sm:$0xff]  }
  0xba   :  { %2768 = vmatmul.mubr.msk.bf16.vlgmr.msra.gmra.mrb[12].mxu1 %vm1092_vm1, %v3392_v4 }
  0xbb   :  { %1924 = vmatpush1.bf16.msra.mxu1 %v3039_v3  ;;  %v3086_v3 = vld [vmem:[#allocation7 + $0x128] ss:$12 sps:$4 sm:$0xff]  }
  0xbc   :  { %1162 = vmatpush1.bf16.msra.mxu0 %v2948_v48  ;;  %1925 = vmatprep.subr.bf16.mxu1 %v3044_v5  ;;  %v3059_v48 = vld [vmem:[#allocation7 + $0x94] ss:$12 sps:$4 sm:$0xff]   ;;  %v3085_v5 = vld [vmem:[#allocation7 + $0x124] ss:$12 sps:$4 sm:$0xff]  }
  0xbd   :  { %1163 = vmatprep.subr.bf16.mxu0 %v2955_v49  ;;  %v3060_v49 = vld [vmem:[#allocation7 + $0xa8] ss:$12 sps:$4 sm:$0xff]  }
  0xbf   :  { %1926 = vmatpush1.bf16.msra.mxu1 %v3042_v8  ;;  %v3083_v8 = vld [vmem:[#allocation7 + $0x120] ss:$12 sps:$4 sm:$0xff]  }
  0xc0   :  { %1164 = vmatpush1.bf16.msra.mxu0 %v2953_v52  ;;  %1927 = vmatprep.subr.bf16.mxu1 %v3047_v9  ;;  %v3066_v52 = vld [vmem:[#allocation7 + $0xc8] ss:$12 sps:$4 sm:$0xff]  }
  0xc1   :  { %1165 = vmatprep.subr.bf16.mxu0 %v2960_v53  ;;  %v3067_v53 = vld [vmem:[#allocation7 + $0x8] ss:$12 sps:$4 sm:$0xff]  }
  0xc2   :  { %v3090_v9 = vld [vmem:[#allocation7 + $0x13c] ss:$12 sps:$4 sm:$0xff]  }
  0xc3   :  { %1928 = vmatpush1.bf16.msra.mxu1 %v3045_v12 }
  0xc4   :  { %1166 = vmatpush1.bf16.msra.mxu0 %v2958_v56  ;;  %1929 = vmatprep.subr.bf16.mxu1 %v3050_v13  ;;  %v3070_v56 = vld [vmem:[#allocation7 + $0xdc] ss:$12 sps:$4 sm:$0xff]  }
  0xc5   :  { %1167 = vmatprep.subr.bf16.mxu0 %v2965_v57  ;;  %v3072_v57 = vld [vmem:[#allocation7 + $0x20] ss:$12 sps:$4 sm:$0xff]  }
  0xc7   :  { %1930 = vmatpush1.bf16.msra.mxu1 %v3048_v16 }
  0xc8   :  { %1168 = vmatpush1.bf16.msra.mxu0 %v2963_v59  ;;  %1931 = vmatprep.subr.bf16.mxu1 %v3053_v22  ;;  %v3068_v59 = vld [vmem:[#allocation7 + $0xd8] ss:$12 sps:$4 sm:$0xff]  }
  0xc9   :  { %1178 = vmatprep.subr.bf16.mxu0 %v2970_v62  ;;  %v3081_v62 = vld [vmem:[#allocation7 + $0x110] ss:$12 sps:$4 sm:$0xff]  }
  0xcb   :  { %1170 = vmatmul.mubr.bf16.vlgmr.msra.gmra.mrb[0].mxu0 %v3383_v24  ;;  %v3005_v24 = vld [vmem:[#allocation5 + $0x3ac] ss:$12 sps:$4 sm:$0xff]   ;;  %1932 = vmatpush1.bf16.msra.mxu1 %v3051_v21  ;;  %v3097_v21 = vld [vmem:[#allocation7 + $0x98] ss:$12 sps:$4 sm:$0xff]  }
  0xcc   :  { %1179 = vmatpush1.bf16.msra.mxu0 %v2968_v1  ;;  %1210 = vmatprep.mubr.bf16.mxu0 %v93_v43  ;;  %v3033_v43 = vld [vmem:[#allocation5 + $0x468] ss:$12 sps:$4 sm:$0xff]   ;;  %v3080_v1 = vld [vmem:[#allocation7 + $0x10c] ss:$12 sps:$4 sm:$0xff]  }
  0xcd   :  { %1180 = vmatprep.subr.bf16.mxu0 %v2975_v2  ;;  %1933 = vmatprep.subr.bf16.mxu1 %v3056_v39  ;;  %v3082_v2 = vld [vmem:[#allocation7 + $0x50] ss:$12 sps:$4 sm:$0xff]  }
  0xcf   :  { %1934 = vmatpush1.bf16.msra.mxu1 %v3054_v38 }
  0xd0   :  { %1181 = vmatpush1.bf16.msra.mxu0 %v2973_v6  ;;  %1935 = vmatprep.subr.bf16.mxu1 %v3059_v48  ;;  %v3087_v6 = vld [vmem:[#allocation7 + $0x68] ss:$12 sps:$4 sm:$0xff]  }
  0xd1   :  { %1182 = vmatprep.subr.bf16.mxu0 %v2980_v7  ;;  %v3091_v7 = vld [vmem:[#allocation7 + $0x140] ss:$12 sps:$4 sm:$0xff]  }
  0xd3   :  { %1936 = vmatpush1.bf16.msra.mxu1 %v3057_v47 }
  0xd4   :  { %1183 = vmatpush1.bf16.msra.mxu0 %v2978_v10  ;;  %1937 = vmatprep.subr.bf16.mxu1 %v3062_v50  ;;  %v3092_v10 = vld [vmem:[#allocation7 + $0x80] ss:$12 sps:$4 sm:$0xff]  }
  0xd5   :  { %1184 = vmatprep.subr.bf16.mxu0 %v2985_v11  ;;  %v3088_v11 = vld [vmem:[#allocation7 + $0x138] ss:$12 sps:$4 sm:$0xff]  }
  0xd7   :  { %1938 = vmatpush1.bf16.msra.mxu1 %v3060_v49 }
  0xd8   :  { %1185 = vmatpush1.bf16.msra.mxu0 %v2983_v14  ;;  %1939 = vmatprep.subr.bf16.mxu1 %v3065_v51 }
  0xd9   :  { %1186 = vmatprep.subr.bf16.mxu0 %v2990_v15 }
  0xdb   :  { %1940 = vmatpush1.bf16.msra.mxu1 %v3063_v55 }
  0xdc   :  { %1187 = vmatpush1.bf16.msra.mxu0 %v2988_v17  ;;  %1941 = vmatprep.subr.bf16.mxu1 %v3070_v56  ;;  %v293_v17 = vlaneseq }
  0xdd   :  { %1188 = vmatprep.subr.bf16.mxu0 %v2995_v18  ;;  %v3095_v18 = vld [vmem:[#allocation7 + $0x154] ss:$12 sps:$4 sm:$0xff]  }
  0xde   :  { %v3401_v22 = vshrl.u32 %v293_v17, 7 }
  0xdf   :  { %1942 = vmatpush1.bf16.msra.mxu1 %v3068_v59 }
  0xe0   :  { %1189 = vmatpush1.bf16.msra.mxu0 %v2993_v19  ;;  %1943 = vmatprep.subr.bf16.mxu1 %v3075_v60  ;;  %v3093_v19 = vld [vmem:[#allocation7 + $0x150] ss:$12 sps:$4 sm:$0xff]   ;;  %v295_v50 = vsub.s32 0, %v3401_v22  ;;  %v299_v51 = vsub.s32 1, %v3401_v22 }
  0xe1   :  { %1190 = vmatprep.subr.bf16.mxu0 %v3000_v20  ;;  %v3096_v20 = vld [vmem:[#allocation7 + $0x158] ss:$12 sps:$4 sm:$0xff]  }
  0xe3   :  { %1944 = vmatpush1.bf16.msra.mxu1 %v3073_v0  ;;  %v3103_v0 = vld [vmem:[#allocation7 + $0x180] ss:$12 sps:$4 sm:$0xff]  }
  0xe4   :  { %1191 = vmatpush1.bf16.msra.mxu0 %v2998_v23  ;;  %1945 = vmatprep.subr.bf16.mxu1 %v3080_v1  ;;  %v3100_v23 = vld [vmem:[#allocation7 + $0x16c] ss:$12 sps:$4 sm:$0xff]  }
  0xe5   :  { %1192 = vmatprep.subr.bf16.mxu0 %v3005_v24  ;;  %v3098_v24 = vld [vmem:[#allocation7 + $0x168] ss:$12 sps:$4 sm:$0xff]  }
  0xe8   :  { %1193 = vmatpush1.bf16.msra.mxu0 %v3003_v25  ;;  %v3101_v25 = vld [vmem:[#allocation7 + $0x170] ss:$12 sps:$4 sm:$0xff]  }
  0xe9   :  { %1194 = vmatprep.subr.bf16.mxu0 %v3010_v26  ;;  %v3102_v26 = vld [vmem:[#allocation7 + $0xb0] ss:$12 sps:$4 sm:$0xff]  }
  0xec   :  { %1195 = vmatpush1.bf16.msra.mxu0 %v3008_v27  ;;  %v303_v27 = vsub.s32 2, %v3401_v22 }
  0xed   :  { %1196 = vmatprep.subr.bf16.mxu0 %v3015_v28  ;;  %v3105_v28 = vld [vmem:[#allocation7 + $0x184] ss:$12 sps:$4 sm:$0xff]  }
  0xf0   :  { %1197 = vmatpush1.bf16.msra.mxu0 %v3013_v29  ;;  %v291_v29 = vld [vmem:[%s3462_s2] sm:$0x7] }
  0xf1   :  { %1198 = vmatprep.subr.bf16.mxu0 %v3019_v30  ;;  %v304_v30 = vrot.slane %v291_v29, %v303_v27 }
  0xf4   :  { %1199 = vmatpush1.bf16.msra.mxu0 %v3017_v31 }
  0xf5   :  { %1200 = vmatprep.subr.bf16.mxu0 %v3022_v32 }
  0xf8   :  { %1201 = vmatpush1.bf16.msra.mxu0 %v3020_v33 }
  0xf9   :  { %1202 = vmatprep.subr.bf16.mxu0 %v3026_v34 }
  0xfc   :  { %1203 = vmatpush1.bf16.msra.mxu0 %v3024_v35 }
  0xfd   :  { %1204 = vmatprep.subr.bf16.mxu0 %v3029_v36 }
 0x100   :  { %1205 = vmatpush1.bf16.msra.mxu0 %v3027_v37 }
 0x101   :  { %1206 = vmatprep.subr.bf16.mxu0 %v3032_v40 }
 0x104   :  { %1207 = vmatpush1.bf16.msra.mxu0 %v3030_v41 }
 0x105   :  { %1208 = vmatprep.subr.bf16.mxu0 %v3035_v42 }
 0x108   :  { %1209 = vmatpush1.bf16.msra.mxu0 %v3033_v43 }
 0x109   :  { %1219 = vmatprep.subr.bf16.mxu0 %v3038_v44 }
 0x10b   :  { %1211 = vmatmul.mubr.bf16.vlgmr.msra.gmra.mrb[0].mxu0 %v3386_v58  ;;  %v3076_v58 = vld [vmem:[#allocation7 + $0xf8] ss:$12 sps:$4 sm:$0xff]  }
 0x10c   :  { %1220 = vmatpush1.bf16.msra.mxu0 %v3036_v45  ;;  %1251 = vmatprep.mubr.bf16.mxu0 %v3287_v46 }
 0x10d   :  { %2703 = vmatprep.subr.bf16.mxu0 %v3066_v52  ;;  %v296_v52 = vrot.slane %v291_v29, %v295_v50 }
 0x117   :  { %2536 = vmatmul.mubr.msk.bf16.vlgmr.msra.gmra.mrb[0].mxu0 %vm1092_vm1, %v3392_v4  ;;  %v3078_v4 = vld [vmem:[#allocation7 + $0x108] ss:$12 sps:$4 sm:$0xff]  }
 0x118   :  { %2704 = vmatpush3.bf16.msra.mxu0 %v3067_v53  ;;  %1946 = vmatpush1.bf16.msra.mxu1 %v3078_v4  ;;  %v300_v53 = vrot.slane %v291_v29, %v299_v51  ;;  %v3111_v4 = vld [vmem:[#allocation7 + $0x1b4] ss:$12 sps:$4 sm:$0xff]   ;;  %v3137_v29 = vld [vmem:[#allocation8 + $0x48] sm:$0xff]  }
 0x119   :  { %2705 = vmatprep.subr.bf16.mxu0 %v3071_v54  ;;  %1947 = vmatprep.subr.bf16.mxu1 %v3085_v5  ;;  %v3109_v5 = vld [vmem:[#allocation7 + $0x1b0] ss:$12 sps:$4 sm:$0xff]  }
 0x11c   :  { %2706 = vmatpush3.bf16.msra.mxu0 %v3072_v57  ;;  %1948 = vmatpush1.bf16.msra.mxu1 %v3083_v8  ;;  %v3117_v8 = vld [vmem:[#allocation7 + $0x1e4] ss:$12 sps:$4 sm:$0xff]  }
 0x11d   :  { %2707 = vmatprep.subr.bf16.mxu0 %v3076_v58  ;;  %1949 = vmatprep.subr.bf16.mxu1 %v3090_v9  ;;  %v3115_v9 = vld [vmem:[#allocation7 + $0x1e0] ss:$12 sps:$4 sm:$0xff]  }
 0x120   :  { %2708 = vmatpush3.bf16.msra.mxu0 %v3077_v61  ;;  %1950 = vmatpush1.bf16.msra.mxu1 %v3088_v11  ;;  %v3118_v11 = vld [vmem:[#allocation7 + $0x1f8] ss:$12 sps:$4 sm:$0xff]  }
 0x121   :  { %2709 = vmatprep.subr.bf16.mxu0 %v3081_v62  ;;  %1951 = vmatprep.subr.bf16.mxu1 %v3095_v18  ;;  %v3128_v18 = vld [vmem:[#allocation7 + $0x1a0] ss:$12 sps:$4 sm:$0xff]  }
 0x124   :  { %2710 = vmatpush3.bf16.msra.mxu0 %v3082_v2  ;;  %1952 = vmatpush1.bf16.msra.mxu1 %v3093_v19  ;;  %v3108_v2 = vld [vmem:[#allocation7 + $0x19c] ss:$12 sps:$4 sm:$0xff]   ;;  %v3129_v19 = vld [vmem:[#allocation7 + $0x1b8] ss:$12 sps:$4 sm:$0xff]  }
 0x125   :  { %2711 = vmatprep.subr.bf16.mxu0 %v3086_v3  ;;  %1953 = vmatprep.subr.bf16.mxu1 %v3100_v23  ;;  %v3106_v3 = vld [vmem:[#allocation7 + $0x198] ss:$12 sps:$4 sm:$0xff]   ;;  %v3132_v23 = vld [vmem:[#allocation7 + $0x200] ss:$12 sps:$4 sm:$0xff]  }
 0x128   :  { %2712 = vmatpush3.bf16.msra.mxu0 %v3087_v6  ;;  %1954 = vmatpush1.bf16.msra.mxu1 %v3098_v24  ;;  %v3114_v6 = vld [vmem:[#allocation7 + $0x1cc] ss:$12 sps:$4 sm:$0xff]  }
 0x129   :  { %2713 = vmatprep.subr.bf16.mxu0 %v3091_v7  ;;  %1964 = vmatprep.subr.bf16.mxu1 %v3105_v28  ;;  %v3112_v7 = vld [vmem:[#allocation7 + $0x1c8] ss:$12 sps:$4 sm:$0xff]   ;;  %v3133_v24 = vld [vmem:[#allocation7 + $0x218] ss:$12 sps:$4 sm:$0xff]  }
 0x12a   :  { %v3136_v28 = vld [vmem:[#allocation8] sm:$0xff]  }
 0x12c   :  { %2714 = vmatpush3.bf16.msra.mxu0 %v3092_v10  ;;  %v3120_v10 = vld [vmem:[#allocation7 + $0x1fc] ss:$12 sps:$4 sm:$0xff]  }
 0x12d   :  { %2715 = vmatprep.subr.bf16.mxu0 %v3096_v20  ;;  %v3130_v20 = vld [vmem:[#allocation7 + $0x1d0] ss:$12 sps:$4 sm:$0xff]  }
 0x130   :  { %2716 = vmatpush3.bf16.msra.mxu0 %v3097_v21  ;;  %v3131_v21 = vld [vmem:[#allocation7 + $0x1e8] ss:$12 sps:$4 sm:$0xff]  }
 0x131   :  { %2717 = vmatprep.subr.bf16.mxu0 %v3101_v25  ;;  %v3134_v25 = vld [vmem:[#allocation7 + $0x230] ss:$12 sps:$4 sm:$0xff]  }
 0x134   :  { %2718 = vmatpush3.bf16.msra.mxu0 %v3102_v26  ;;  %v3135_v26 = vld [vmem:[#allocation8 + $0x40] sm:$0xff]  }
 0x135   :  { %2734 = vmatprep.subr.bf16.mxu0 %v3135_v26 }
 0x145   :  { %v2651_v12 = vpop.f32.mrb[0].mxu1 }
 0x146   :  { %v2652_v13 = vpop.f32.mrb[1].mxu1 }
 0x147   :  { %v2653_v14 = vadd.f32 %v2652_v13, %v2651_v12  ;;  %v2654_v15 = vpop.f32.mrb[2].mxu1  ;;  %v3123_v12 = vld [vmem:[#allocation7 + $0x214] ss:$12 sps:$4 sm:$0xff]   ;;  %v3126_v13 = vld [vmem:[#allocation7 + $0x22c] ss:$12 sps:$4 sm:$0xff]  }
 0x148   :  { %v2655_v16 = vpop.f32.mrb[3].mxu1 }
 0x149   :  { %v1295_v31 = vadd.f32 %v2653_v14, %v304_v30  ;;  %v3124_v14 = vld [vmem:[#allocation7 + $0x228] ss:$12 sps:$4 sm:$0xff]  }
 0x14a   :  { %v3127_v16 = vld [vmem:[#allocation7 + $0x188] ss:$12 sps:$4 sm:$0xff]  }
 0x14b   :  { %v3138_v30 = vld [vmem:[#allocation8 + $0x8] sm:$0xff]  }
 0x165   :  { %v2673_v32 = vpop.f32.mrb[4].mxu1 }
 0x166   :  { %v2674_v33 = vpop.f32.mrb[5].mxu1 }
 0x167   :  { %v2675_v34 = vadd.f32 %v2674_v33, %v2673_v32  ;;  %v2676_v35 = vpop.f32.mrb[6].mxu1  ;;  %v3140_v32 = vld [vmem:[#allocation8 + $0x10] sm:$0xff]   ;;  %v3141_v33 = vld [vmem:[#allocation8 + $0x58] sm:$0xff]  }
 0x168   :  { %v2677_v36 = vpop.f32.mrb[7].mxu1  ;;  %v3143_v35 = vld [vmem:[#allocation8 + $0x60] sm:$0xff]  }
 0x169   :  { %v1335_v37 = vadd.f32 %v2675_v34, %v1295_v31  ;;  %v3139_v31 = vld [vmem:[#allocation8 + $0x50] sm:$0xff]   ;;  %v3142_v34 = vld [vmem:[#allocation8 + $0x18] sm:$0xff]   ;;  %v3144_v36 = vld [vmem:[#allocation8 + $0x20] sm:$0xff]  }
 0x185   :  { %v2695_v38 = vpop.f32.mrb[8].mxu1 }
 0x186   :  { %v2696_v39 = vpop.f32.mrb[9].mxu1 }
 0x187   :  { %v2697_v40 = vadd.f32 %v2696_v39, %v2695_v38  ;;  %v2698_v41 = vpop.f32.mrb[10].mxu1  ;;  %v3146_v38 = vld [vmem:[#allocation8 + $0x28] sm:$0xff]   ;;  %v3147_v39 = vld [vmem:[#allocation8 + $0x70] sm:$0xff]  }
 0x188   :  { %v2699_v42 = vpop.f32.mrb[11].mxu1  ;;  %v3149_v41 = vld [vmem:[#allocation8 + $0x78] sm:$0xff]  }
 0x189   :  { %v1375_v43 = vadd.f32 %v2697_v40, %v1335_v37  ;;  %v3145_v37 = vld [vmem:[#allocation8 + $0x68] sm:$0xff]   ;;  %v3148_v40 = vld [vmem:[#allocation8 + $0x30] sm:$0xff]   ;;  %v3150_v42 = vld [vmem:[#allocation8 + $0x38] sm:$0xff]  }
 0x18d   :  { %v1414_v44 = vpop.f32.mrb[12].mxu1 }
 0x18e   :  { %v1415_v45 = vadd.f32 %v1414_v44, %v1375_v43  ;;  %v2769_v47 = vpop.f32.mrb[13].mxu1  ;;  %v3151_v43 = vld [vmem:[#allocation8 + $0x80] sm:$0xff]   ;;  %v3152_v44 = vld [vmem:[#allocation8 + $0x88] sm:$0xff]  }
 0x18f   :  { %v1417_v48 = vpop.f32.mrb[14].mxu1  ;;  %v3154_v47 = vld [vmem:[#allocation8 + $0x98] sm:$0xff]  }
 0x190   :  { %v2770_v49 = vpop.f32.mrb[15].mxu1  ;;  %v1422_v15 = vmax.f32 %v1415_v45, 0.0  ;;  %v3153_v45 = vld [vmem:[#allocation8 + $0x90] sm:$0xff]   ;;  %v3155_v48 = vld [vmem:[#allocation8 + $0xa0] sm:$0xff]  }
 0x191   :  { %v3156_v49 = vld [vmem:[#allocation8 + $0xa8] sm:$0xff]  }
 0x192   :  { %v1425_v17 = vpack.c.bf16 %v1422_v15, %v1422_v15 }
 0x1ea   :  { %v1253_v54 = vpop.f32.mrb[0].mxu0 }
 0x1eb   :  { %v2811_v55 = vadd.f32 %v1253_v54, %v296_v52  ;;  %v1255_v56 = vpop.f32.mrb[1].mxu0  ;;  %v3157_v52 = vld [vmem:[#allocation8 + $0xb0] sm:$0xff]  }
 0x1ec   :  { %v2812_v57 = vadd.f32 %v1255_v56, %v300_v53  ;;  %v1257_v58 = vpop.f32.mrb[2].mxu0  ;;  %v3158_v53 = vld [vmem:[#allocation8 + $0xb8] sm:$0xff]  }
 0x1ed   :  { %v1420_v59 = vmax.f32 %v2811_v55, 0.0  ;;  %v1258_v60 = vpop.f32.mrb[3].mxu0 }
 0x1ee   :  { %v1421_v61 = vmax.f32 %v2812_v57, 0.0 }
 0x1ef   :  { %v1423_v1 = vpack.c.bf16 %v1420_v59, %v1420_v59  ;;  %v1522_v59 = vld [vmem:[%s3464_s4] sm:$0x7] }
 0x1f0   :  { %v1424_v62 = vpack.c.bf16 %v1421_v61, %v1421_v61  ;;  %v1527_v60 = vrot.slane %v1522_v59, %v295_v50  ;;  %v1531_v61 = vrot.slane %v1522_v59, %v299_v51 }
 0x1f2   :  { %1955 = vmatprep.mubr.bf16.mxu1 %v1424_v62  ;;  %2037 = vmatprep.mubr.bf16.mxu0 %v1424_v62 }
 0x1f3   :  { %1956 = vmatmul.mubr.bf16.vlgmr.msra.gmra.mrb[16].mxu1 %v1423_v1  ;;  %2038 = vmatmul.mubr.bf16.vlgmr.msra.gmra.mrb[4].mxu0 %v1423_v1 }
 0x1f4   :  { %1965 = vmatpush1.bf16.msra.mxu1 %v3103_v0  ;;  %1996 = vmatprep.mubr.bf16.mxu1 %v3287_v46  ;;  %v3121_v46 = vld [vmem:[#allocation7 + $0x210] ss:$12 sps:$4 sm:$0xff]  }
 0x1f5   :  { %1966 = vmatprep.subr.bf16.mxu1 %v3108_v2  ;;  %2735 = vmatpush3.bf16.msra.mxu0 %v3136_v28 }
 0x1f6   :  { %2736 = vmatprep.subr.bf16.mxu0 %v3137_v29 }
 0x1f8   :  { %1967 = vmatpush1.bf16.msra.mxu1 %v3106_v3 }
 0x1f9   :  { %1968 = vmatprep.subr.bf16.mxu1 %v3111_v4  ;;  %2737 = vmatpush3.bf16.msra.mxu0 %v3138_v30 }
 0x1fa   :  { %2738 = vmatprep.subr.bf16.mxu0 %v3139_v31 }
 0x1fc   :  { %1969 = vmatpush1.bf16.msra.mxu1 %v3109_v5 }
 0x1fd   :  { %1970 = vmatprep.subr.bf16.mxu1 %v3114_v6  ;;  %2739 = vmatpush3.bf16.msra.mxu0 %v3140_v32 }
 0x1fe   :  { %2740 = vmatprep.subr.bf16.mxu0 %v3141_v33 }
 0x200   :  { %1971 = vmatpush1.bf16.msra.mxu1 %v3112_v7 }
 0x201   :  { %1972 = vmatprep.subr.bf16.mxu1 %v3117_v8  ;;  %2741 = vmatpush3.bf16.msra.mxu0 %v3142_v34  ;;  %v1535_v8 = vrot.slane %v1522_v59, %v303_v27 }
 0x202   :  { %2742 = vmatprep.subr.bf16.mxu0 %v3143_v35 }
 0x204   :  { %1973 = vmatpush1.bf16.msra.mxu1 %v3115_v9 }
 0x205   :  { %1974 = vmatprep.subr.bf16.mxu1 %v3120_v10  ;;  %2743 = vmatpush3.bf16.msra.mxu0 %v3144_v36 }
 0x206   :  { %2744 = vmatprep.subr.bf16.mxu0 %v3145_v37 }
 0x208   :  { %1975 = vmatpush1.bf16.msra.mxu1 %v3118_v11 }
 0x209   :  { %1976 = vmatprep.subr.bf16.mxu1 %v3123_v12  ;;  %2745 = vmatpush3.bf16.msra.mxu0 %v3146_v38 }
 0x20a   :  { %2746 = vmatprep.subr.bf16.mxu0 %v3147_v39 }
 0x20c   :  { %1977 = vmatpush1.bf16.msra.mxu1 %v3121_v46 }
 0x20d   :  { %1978 = vmatprep.subr.bf16.mxu1 %v3126_v13  ;;  %2747 = vmatpush3.bf16.msra.mxu0 %v3148_v40 }
 0x20e   :  { %2748 = vmatprep.subr.bf16.mxu0 %v3149_v41 }
 0x210   :  { %1979 = vmatpush1.bf16.msra.mxu1 %v3124_v14 }
 0x211   :  { %2771 = vmatprep.subr.bf16.mxu1 %v3285_v63  ;;  %2749 = vmatpush3.bf16.msra.mxu0 %v3150_v42 }
 0x213   :  { %1997 = vmatmul.mubr.bf16.vlgmr.msra.gmra.mrb[16].mxu1 %v1425_v17 }
 0x214   :  { %2772 = vmatpush3.bf16.msra.mxu1 %v3127_v16  ;;  %2787 = vmatprep.mubr.msk.bf16.mxu1 %vm3286_vm0, %v3285_v63 }
 0x215   :  { %2773 = vmatprep.subr.bf16.mxu1 %v3285_v63 }
 0x218   :  { %2774 = vmatpush3.bf16.msra.mxu1 %v3128_v18 }
 0x219   :  { %2775 = vmatprep.subr.bf16.mxu1 %v3285_v63 }
 0x21c   :  { %2776 = vmatpush3.bf16.msra.mxu1 %v3129_v19  ;;  %v2610_v19 = vld [vmem:[%s3466_s6] ss:$0 sm:$0xff] }
 0x21d   :  { %2777 = vmatprep.subr.bf16.mxu1 %v3285_v63 }
 0x220   :  { %2778 = vmatpush3.bf16.msra.mxu1 %v3130_v20 }
 0x221   :  { %2779 = vmatprep.subr.bf16.mxu1 %v3285_v63 }
 0x224   :  { %2780 = vmatpush3.bf16.msra.mxu1 %v3131_v21 }
 0x225   :  { %2781 = vmatprep.subr.bf16.mxu1 %v3285_v63 }
 0x228   :  { %2782 = vmatpush3.bf16.msra.mxu1 %v3132_v23 }
 0x229   :  { %2783 = vmatprep.subr.bf16.mxu1 %v3285_v63 }
 0x22c   :  { %2784 = vmatpush3.bf16.msra.mxu1 %v3133_v24 }
 0x22d   :  { %2785 = vmatprep.subr.bf16.mxu1 %v3285_v63 }
 0x230   :  { %2786 = vmatpush3.bf16.msra.mxu1 %v3134_v25 }
 0x231   :  { %2791 = vmatprep.subr.bf16.mxu1 %v3285_v63 }
 0x233   :  { %2788 = vmatmul.mubr.bf16.vlgmr.msra.gmra.mrb[20].mxu1 %v1425_v17 }
 0x234   :  { %2807 = vmatprep.mubr.msk.bf16.mxu1 %vm3286_vm0, %v3285_v63  ;;  %2792 = vmatpush3.bf16.msra.mxu1 %v3151_v43 }
 0x235   :  { %2793 = vmatprep.subr.bf16.mxu1 %v3285_v63 }
 0x238   :  { %2794 = vmatpush3.bf16.msra.mxu1 %v3152_v44 }
 0x239   :  { %2795 = vmatprep.subr.bf16.mxu1 %v3285_v63 }
 0x23c   :  { %2796 = vmatpush3.bf16.msra.mxu1 %v3153_v45 }
 0x23d   :  { %2797 = vmatprep.subr.bf16.mxu1 %v3285_v63 }
 0x240   :  { %2798 = vmatpush3.bf16.msra.mxu1 %v3154_v47 }
 0x241   :  { %2799 = vmatprep.subr.bf16.mxu1 %v3285_v63 }
 0x244   :  { %2800 = vmatpush3.bf16.msra.mxu1 %v3155_v48 }
 0x245   :  { %2801 = vmatprep.subr.bf16.mxu1 %v3285_v63 }
 0x248   :  { %2802 = vmatpush3.bf16.msra.mxu1 %v3156_v49 }
 0x249   :  { %2803 = vmatprep.subr.bf16.mxu1 %v3285_v63 }
 0x24c   :  { %2804 = vmatpush3.bf16.msra.mxu1 %v3157_v52 }
 0x24d   :  { %2805 = vmatprep.subr.bf16.mxu1 %v3285_v63 }
 0x250   :  { %2806 = vmatpush3.bf16.msra.mxu1 %v3158_v53 }
 0x2c6   :  { %v2719_v54 = vpop.f32.mrb[4].mxu0 }
 0x2c7   :  { %v2720_v55 = vpop.f32.mrb[5].mxu0 }
 0x2c8   :  { %v2721_v56 = vadd.f32 %v2720_v55, %v2719_v54  ;;  %v2722_v57 = vpop.f32.mrb[6].mxu0 }
 0x2c9   :  { %v2723_v58 = vpop.f32.mrb[7].mxu0 }
 0x2ca   :  { %v2040_v9 = vadd.f32 %v2721_v56, %v1535_v8 }
 0x2e6   :  { %v1998_v62 = vpop.f32.mrb[16].mxu1 }
 0x2e7   :  { %v2813_v0 = vadd.f32 %v1998_v62, %v1527_v60  ;;  %v2000_v63 = vpop.f32.mrb[17].mxu1 }
 0x2e8   :  { %v2814_v1 = vadd.f32 %v2000_v63, %v1531_v61  ;;  %v2002_v2 = vpop.f32.mrb[18].mxu1 }
 0x2e9   :  { %v2085_v3 = vmax.f32 %v2813_v0, 0.0  ;;  %v2003_v4 = vpop.f32.mrb[19].mxu1 }
 0x2ea   :  { %v2086_v5 = vmax.f32 %v2814_v1, 0.0 }
 0x2eb   :  { %v2088_v7 = vpack.c.bf16 %v2085_v3, %v2085_v3 }
 0x2ec   :  { %v2089_v6 = vpack.c.bf16 %v2086_v5, %v2086_v5 }
 0x2ee   :  { %2322 = vmatprep.mubr.bf16.mxu0 %v2089_v6 }
 0x2ef   :  { %2323 = vmatmul.mubr.bf16.vlgmr.msra.gmra.mrb[8].mxu0 %v2088_v7 }
 0x306   :  { %v2079_v50 = vpop.f32.mrb[20].mxu1 }
 0x307   :  { %v2080_v10 = vadd.f32 %v2079_v50, %v2040_v9  ;;  %v2789_v11 = vpop.f32.mrb[21].mxu1 }
 0x308   :  { %v2082_v51 = vpop.f32.mrb[22].mxu1 }
 0x309   :  { %v2087_v12 = vmax.f32 %v2080_v10, 0.0  ;;  %v2790_v46 = vpop.f32.mrb[23].mxu1 }
 0x30b   :  { %v2090_v13 = vpack.c.bf16 %v2087_v12, %v2087_v12 }
 0x30d   :  { %2808 = vmatmul.mubr.bf16.vlgmr.msra.gmra.mrb[24].mxu1 %v2090_v13 }
 0x3c2   :  { %v2750_v14 = vpop.f32.mrb[8].mxu0 }
 0x3c3   :  { %v2751_v15 = vpop.f32.mrb[9].mxu0 }
 0x3c4   :  { %v2752_v16 = vadd.f32 %v2751_v15, %v2750_v14  ;;  %v2753_v17 = vpop.f32.mrb[10].mxu0 }
 0x3c5   :  { %v2754_v18 = vpop.f32.mrb[11].mxu0 }
 0x3c6   :  { %v2325_v22 = vadd.f32 %v2752_v16, %v2610_v19 }
 0x3e0   :  { %v2364_v27 = vpop.f32.mrb[24].mxu1 }
 0x3e1   :  { %v2365_v20 = vadd.f32 %v2364_v27, %v2325_v22  ;;  %v2809_v21 = vpop.f32.mrb[25].mxu1 }
 0x3e2   :  { %v2367_v23 = vpop.f32.mrb[26].mxu1 }
 0x3e3   :  { %v2370_v24 = vpack.c.bf16 %v2365_v20, %v2365_v20  ;;  %v2810_v25 = vpop.f32.mrb[27].mxu1 }
 0x3e5   :  { %2371 = vst [vmem:[#allocation10] sm:$0xf] %v2370_v24 }
 0x3e6   :  { %3258 = shalt.err (!%p3255_p8)
}
 0x3e7   :  { %s3259_s10 = scalar_lea.hbm %s3467_s7, 64 }
 0x3e8   :  { %p3260_p9 = scmp.ne.s32.totalorder %s3467_s7, %s3259_s10  ;;  %p3263_p10 = scmp.lt.u32.totalorder %s3259_s10, %s3467_s7 }
 0x3ea   :  { %p3265_p11 = pnand %p3263_p10, %p3260_p9 }
 0x3ec   :  { %3268 = shalt.err (!%p3265_p11)
}
 0x3ed   :  { %2381 = dma.vmem_to_hbm [thread:$0]  %s2379_s30, 64, %s3467_s7, [#allocation4]  }
 0x3ee   :  { %3275 = dma.done.wait [#allocation4], 64  }
 0x3ef   :  { %3276 = vsyncadd [#allocation4], 4294967232 }
 0x3f0   :  { %2385 = vsyncpa [#allocation3], 1 }
 0x3f1   :  { %2386 = vsyncpa [#allocation6], 1 }
 0x3f2   :  { %2387 = vsyncpa [#allocation9], 1 }
 0x3f3   :  { %2388 = vsyncpa [#allocation4], 1 }

</bundles_post_ra>
